<compile_context>
chip_gen: v7x
topology: tpu7x:2x2x1
jax: 0.10.0
libtpu: 0.0.40
codegen_flags: <defaults>
</compile_context>

<pallas_src>
import functools

import jax
import jax.numpy as jnp
from jax.experimental import pallas as pl
from jax.experimental.pallas import tpu as pltpu


# ---------------------------------------------------------------------------
# Kernels
# ---------------------------------------------------------------------------

def _reslinear_kernel(x_ref, w1t_ref, b1_ref, w2t_ref, o_ref, *, precision):
    """Resident-weight path: both (Fp, Fp) weights stay in VMEM for the whole grid."""
    # h = x @ W1^T + b1  (MXU consumes native dtype, f32 accumulate).  Kept as an
    # SSA value -- no VMEM scratch round-trip.
    h = jnp.dot(x_ref[...], w1t_ref[...],
                preferred_element_type=jnp.float32, precision=precision)
    h = h + b1_ref[...].astype(jnp.float32)

    # y = relu(h) @ W2^T
    relu_h = jnp.maximum(h, 0.0).astype(w2t_ref.dtype)
    y = jnp.dot(relu_h, w2t_ref[...],
                preferred_element_type=jnp.float32, precision=precision)

    # out = y + h  (residual over the post-l1 activation)
    o_ref[...] = (y + h).astype(o_ref.dtype)


def _reslinear_chunked_kernel(x_ref, w1t_ref, b1_ref, w2t_ref, o_ref,
                              h_ref, y_ref, *, precision):
    """Feature-chunked path for large F.

    Grid = (batch_tiles, feature_chunks); the chunk axis ("arbitrary", minor)
    walks the intermediate feature dim so resident weight VMEM is 2*Fp*Fk.
    """
    k = pl.program_id(1)
    nk = pl.num_programs(1)
    fk = w1t_ref.shape[1]

    @pl.when(k == 0)
    def _init():
        y_ref[...] = jnp.zeros_like(y_ref)

    h_chunk = jnp.dot(x_ref[...], w1t_ref[...],
                      preferred_element_type=jnp.float32, precision=precision)
    h_chunk = h_chunk + b1_ref[...].astype(jnp.float32)

    off = pl.multiple_of(k * fk, fk)          # lane-aligned: fk is a multiple of 128
    h_ref[:, pl.ds(off, fk)] = h_chunk        # stash chunk for the final residual

    relu_h = jnp.maximum(h_chunk, 0.0).astype(w2t_ref.dtype)
    y_ref[...] += jnp.dot(relu_h, w2t_ref[...],
                          preferred_element_type=jnp.float32, precision=precision)

    @pl.when(k == nk - 1)
    def _finalize():
        o_ref[...] = (y_ref[...] + h_ref[...]).astype(o_ref.dtype)


# ---------------------------------------------------------------------------
# Wrapper helpers
# ---------------------------------------------------------------------------

def _round_up(x, m):
    return ((x + m - 1) // m) * m


def _vmem_budget():
    """Usable per-core VMEM: chip capacity minus ~15% headroom for Mosaic
    internal scratch / semaphores / pipeline bookkeeping."""
    try:
        cap = int(pltpu.get_tpu_info().vmem_capacity_bytes)
    except Exception:
        cap = 64 << 20            # conservative fallback = v7x per-core VMEM
    return int(cap * 0.85)        # ~54 MiB on v7x, ~109 MiB on v5e/v6e


def _choose_block_b(B, requested):
    bb = 512 if requested is None else requested
    bb = _round_up(min(bb, max(B, 1)), 8)
    if B > 8:
        # Guarantee >= 2 grid steps so the "parallel" batch axis shards across
        # v7x's two TensorCores (harmless on single-TC v5e/v6e).
        bb = min(bb, _round_up(-(-B // 2), 8))
    return max(bb, 8)


def _pick_feature_chunks(Fp, bb, wb, xb, ob, budget):
    """Smallest chunk count (dividing Fp/128) whose working set fits VMEM."""
    n_groups = Fp // 128
    stream = 2 * bb * Fp * (xb + ob)          # x + out tiles, double-buffered
    scratch = 2 * bb * Fp * 4                 # f32 h + y_acc scratch
    for nc in range(1, n_groups + 1):
        if n_groups % nc:
            continue
        fk = Fp // nc
        weights = 2 * (2 * Fp * fk * wb + fk * wb)   # double-buffered chunks + bias
        if weights + stream + scratch <= budget:
            return nc
    return n_groups                           # best effort: maximum chunking


def prepare_weights(w1, b1, w2, *, compute_dtype=None):
    """One-time weight prep (call at model init and cache the result).

    Pads features to a multiple of 128 lanes and pre-transposes both weights to
    (in, out) layout so the kernel computes x @ W^T with no in-kernel transpose.
    Optionally casts to `compute_dtype` (e.g. jnp.bfloat16: native MXU rate and
    half the weight VMEM / HBM traffic).
    """
    F = w1.shape[0]
    Fp = _round_up(max(F, 128), 128)
    pad = Fp - F
    w1t = jnp.pad(w1, ((0, pad), (0, pad))).T
    w2t = jnp.pad(w2, ((0, pad), (0, pad))).T
    b1p = jnp.pad(b1, (0, pad)).reshape(1, Fp)
    if compute_dtype is not None:
        w1t = w1t.astype(compute_dtype)
        w2t = w2t.astype(compute_dtype)
        b1p = b1p.astype(compute_dtype)
    return w1t, b1p, w2t


# ---------------------------------------------------------------------------
# Entry points
# ---------------------------------------------------------------------------

@functools.partial(jax.jit, static_argnames=("block_b", "feature_chunks"))
def res_linear_prepared(x, w1t, b1p, w2t, *, block_b=None, feature_chunks=None):
    """ResLinear forward with pre-prepared (padded, (in,out)-layout) weights.

    x: (B, F); w1t/w2t: (Fp, Fp); b1p: (1, Fp).
    """
    B, F = x.shape
    Fp = w1t.shape[0]
    out_dtype = x.dtype

    bb = _choose_block_b(B, block_b)
    Bp = _round_up(B, bb)
    nb = Bp // bb

    x_p = jnp.pad(x, ((0, Bp - B), (0, Fp - F)))
    if x_p.dtype != w1t.dtype:
        x_p = x_p.astype(w1t.dtype)          # e.g. bf16 compute path

    wb = w1t.dtype.itemsize
    xb = x_p.dtype.itemsize
    ob = jnp.dtype(out_dtype).itemsize
    budget = _vmem_budget()

    # Full f32 accuracy on the MXU when inputs are f32 (default precision may
    # otherwise lower to bf16 passes); bf16 inputs take the native bf16 path.
    precision = (jax.lax.Precision.HIGHEST
                 if x_p.dtype == jnp.float32 and w1t.dtype == jnp.float32
                 else None)

    stream = 2 * bb * Fp * (xb + ob)              # double-buffered x + out tiles
    resident = 2 * Fp * Fp * wb + Fp * wb          # single-buffered weights + bias
    slack = 2 * bb * Fp * 4                        # live f32 h / relu temporaries

    if feature_chunks is not None:
        nchunks = int(feature_chunks)
    elif resident + stream + slack <= budget:
        nchunks = 1
    else:
        nchunks = _pick_feature_chunks(Fp, bb, wb, xb, ob, budget)

    if (Fp // 128) % nchunks != 0:
        raise ValueError(f"feature_chunks={nchunks} must divide Fp/128={Fp // 128}")

    flops = 2 * 2 * Bp * Fp * Fp                   # two (Bp,Fp)x(Fp,Fp) matmuls
    bytes_accessed = (x_p.size * xb + Bp * Fp * ob + 2 * Fp * Fp * wb + Fp * wb)
    cost = pl.CostEstimate(flops=flops, transcendentals=0,
                           bytes_accessed=bytes_accessed)

    if nchunks == 1:
        # Resident-weight path.
        needed = resident + stream + slack
        vmem_limit = min(budget, max(int(needed * 1.2), 32 << 20))
        # NOTE: if profiling shows exposed x/out DMA at small F, sweep
        # pipeline_mode=pl.Buffered(3) on the x/out BlockSpecs.
        out_p = pl.pallas_call(
            functools.partial(_reslinear_kernel, precision=precision),
            out_shape=jax.ShapeDtypeStruct((Bp, Fp), out_dtype),
            grid_spec=pltpu.PrefetchScalarGridSpec(
                num_scalar_prefetch=0,
                grid=(nb,),
                in_specs=[
                    pl.BlockSpec((bb, Fp), lambda i: (i, 0)),          # x tile
                    pl.BlockSpec((Fp, Fp), lambda i: (0, 0),
                                 pipeline_mode=pl.Buffered(1)),        # W1^T resident
                    pl.BlockSpec((1, Fp), lambda i: (0, 0),
                                 pipeline_mode=pl.Buffered(1)),        # b1 resident
                    pl.BlockSpec((Fp, Fp), lambda i: (0, 0),
                                 pipeline_mode=pl.Buffered(1)),        # W2^T resident
                ],
                out_specs=pl.BlockSpec((bb, Fp), lambda i: (i, 0)),
            ),
            compiler_params=pltpu.CompilerParams(
                dimension_semantics=("parallel",),
                vmem_limit_bytes=vmem_limit),
            cost_estimate=cost,
        )(x_p, w1t, b1p, w2t)
    else:
        # Feature-chunked path (large F).
        fk = Fp // nchunks
        needed = (2 * (2 * Fp * fk * wb + fk * wb)   # double-buffered weight chunks
                  + stream + 2 * bb * Fp * 4)        # + f32 h / y_acc scratch
        vmem_limit = min(budget, max(int(needed * 1.2), 32 << 20))
        out_p = pl.pallas_call(
            functools.partial(_reslinear_chunked_kernel, precision=precision),
            out_shape=jax.ShapeDtypeStruct((Bp, Fp), out_dtype),
            grid_spec=pltpu.PrefetchScalarGridSpec(
                num_scalar_prefetch=0,
                grid=(nb, nchunks),
                in_specs=[
                    pl.BlockSpec((bb, Fp), lambda i, k: (i, 0)),   # x (constant over k)
                    pl.BlockSpec((Fp, fk), lambda i, k: (0, k)),   # W1^T[:, chunk]
                    pl.BlockSpec((1, fk), lambda i, k: (0, k)),    # b1[chunk]
                    pl.BlockSpec((fk, Fp), lambda i, k: (k, 0)),   # W2^T[chunk, :]
                ],
                out_specs=pl.BlockSpec((bb, Fp), lambda i, k: (i, 0)),
                scratch_shapes=[pltpu.VMEM((bb, Fp), jnp.float32),   # h
                                pltpu.VMEM((bb, Fp), jnp.float32)],  # y_acc
            ),
            compiler_params=pltpu.CompilerParams(
                dimension_semantics=("parallel", "arbitrary"),
                vmem_limit_bytes=vmem_limit),
            cost_estimate=cost,
        )(x_p, w1t, b1p, w2t)

    return out_p[:B, :F]


def res_linear(x, w1, b1, w2, *, block_b=None, feature_chunks=None,
               compute_dtype=None):
    """Convenience wrapper taking PyTorch-layout weights (out_features, in_features).

    For inference loops, call prepare_weights() once and reuse
    res_linear_prepared() to avoid re-padding/transposing the weights per call.
    """
    w1t, b1p, w2t = prepare_weights(w1, b1, w2, compute_dtype=compute_dtype)
    return res_linear_prepared(x, w1t, b1p, w2t,
                               block_b=block_b, feature_chunks=feature_chunks)


def res_linear_ref(x, w1, b1, w2):
    hp = jax.lax.Precision.HIGHEST
    h = jnp.dot(x, w1.T, precision=hp) + b1
    y = jnp.dot(jnp.maximum(h, 0.0), w2.T, precision=hp)
    return y + h


# ---------------------------------------------------------------------------
# Self-test
# ---------------------------------------------------------------------------

if __name__ == "__main__":
    # --- test 1: small shapes, resident-weight (non-chunked) path -----------
    B, F = 8, 32
    kx, kw1, kb1, kw2 = jax.random.split(jax.random.PRNGKey(0), 4)
    bound = 1.0 / jnp.sqrt(jnp.float32(F))   # mimics nn.Linear uniform init
    x = jax.random.normal(kx, (B, F), dtype=jnp.float32)
    w1 = jax.random.uniform(kw1, (F, F), jnp.float32, -bound, bound)
    b1 = jax.random.uniform(kb1, (F,), jnp.float32, -bound, bound)
    w2 = jax.random.uniform(kw2, (F, F), jnp.float32, -bound, bound)

    w1t, b1p, w2t = prepare_weights(w1, b1, w2)     # hoisted one-time prep
    out = jax.block_until_ready(res_linear_prepared(x, w1t, b1p, w2t))
    ref = res_linear_ref(x, w1, b1, w2)
    assert out.shape == (B, F)
    assert jnp.allclose(out, ref, atol=1e-4, rtol=1e-4), "mismatch (resident path)"

    # --- test 2: exercise the feature-chunked fallback (used for large F) ---
    B2, F2 = 64, 256
    k2 = jax.random.split(jax.random.PRNGKey(1), 4)
    bound2 = 1.0 / jnp.sqrt(jnp.float32(F2))
    x2 = jax.random.normal(k2[0], (B2, F2), dtype=jnp.float32)
    w1_2 = jax.random.uniform(k2[1], (F2, F2), jnp.float32, -bound2, bound2)
    b1_2 = jax.random.uniform(k2[2], (F2,), jnp.float32, -bound2, bound2)
    w2_2 = jax.random.uniform(k2[3], (F2, F2), jnp.float32, -bound2, bound2)
    w1t2, b1p2, w2t2 = prepare_weights(w1_2, b1_2, w2_2)
    out2 = jax.block_until_ready(
        res_linear_prepared(x2, w1t2, b1p2, w2t2, feature_chunks=2))
    ref2 = res_linear_ref(x2, w1_2, b1_2, w2_2)
    assert out2.shape == (B2, F2)
    assert jnp.allclose(out2, ref2, atol=1e-4, rtol=1e-4), "mismatch (chunked path)"

    print("KERNEL_OK")
</pallas_src>

<mosaic_0001>
module attributes {stable_mosaic.version = 11 : i64} {
  func.func @_reslinear_kernel(%arg0: i32, %arg1: memref<8x128xf32, #tpu.memory_space<vmem>>, %arg2: memref<128x128xf32, #tpu.memory_space<vmem>>, %arg3: memref<1x128xf32, #tpu.memory_space<vmem>>, %arg4: memref<128x128xf32, #tpu.memory_space<vmem>>, %arg5: memref<8x128xf32, #tpu.memory_space<vmem>>) attributes {dimension_semantics = [#tpu.dimension_semantics<parallel>], iteration_bounds = array<i64: 1>, scalar_prefetch = 0 : i64, scratch_operands = 0 : i64, tpu.core_type = #tpu.core_type<tc>, window_params = [{transform_indices = @transform_0, window_bounds = array<i64: 8, 128>}, {pipeline_mode = #tpu.pipeline_mode<synchronous>, transform_indices = @transform_1, window_bounds = array<i64: 128, 128>}, {pipeline_mode = #tpu.pipeline_mode<synchronous>, transform_indices = @transform_2, window_bounds = array<i64: 1, 128>}, {pipeline_mode = #tpu.pipeline_mode<synchronous>, transform_indices = @transform_3, window_bounds = array<i64: 128, 128>}, {transform_indices = @transform_4, window_bounds = array<i64: 8, 128>}]} {
    %c0 = arith.constant 0 : index
    %c0_0 = arith.constant 0 : index
    %0 = vector.load %arg1[%c0, %c0_0] : memref<8x128xf32, #tpu.memory_space<vmem>>, vector<8x128xf32>
    %c0_1 = arith.constant 0 : index
    %c0_2 = arith.constant 0 : index
    %1 = vector.load %arg2[%c0_1, %c0_2] : memref<128x128xf32, #tpu.memory_space<vmem>>, vector<128x128xf32>
    %cst = arith.constant dense<0.000000e+00> : vector<8x128xf32>
    %2 = tpu.matmul %0, %1, %cst {dimension_numbers = #tpu.dot_dimension_numbers<[1], [0], [0], [1], [0, 0, 1, 1], [], []>, precision = #tpu.contract_precision<fp32>} : vector<8x128xf32>, vector<128x128xf32>, vector<8x128xf32> -> vector<8x128xf32>
    %c0_3 = arith.constant 0 : index
    %c0_4 = arith.constant 0 : index
    %3 = vector.load %arg3[%c0_3, %c0_4] : memref<1x128xf32, #tpu.memory_space<vmem>>, vector<1x128xf32>
    %4 = vector.broadcast %3 : vector<1x128xf32> to vector<8x128xf32>
    %5 = arith.addf %2, %4 : vector<8x128xf32>
    %cst_5 = arith.constant 0.000000e+00 : f32
    %6 = vector.broadcast %cst_5 : f32 to vector<8x128xf32>
    %7 = arith.maximumf %5, %6 : vector<8x128xf32>
    %c0_6 = arith.constant 0 : index
    %c0_7 = arith.constant 0 : index
    %8 = vector.load %arg4[%c0_6, %c0_7] : memref<128x128xf32, #tpu.memory_space<vmem>>, vector<128x128xf32>
    %cst_8 = arith.constant dense<0.000000e+00> : vector<8x128xf32>
    %9 = tpu.matmul %7, %8, %cst_8 {dimension_numbers = #tpu.dot_dimension_numbers<[1], [0], [0], [1], [0, 0, 1, 1], [], []>, precision = #tpu.contract_precision<fp32>} : vector<8x128xf32>, vector<128x128xf32>, vector<8x128xf32> -> vector<8x128xf32>
    %10 = arith.addf %9, %5 : vector<8x128xf32>
    %c0_9 = arith.constant 0 : index
    %c0_10 = arith.constant 0 : index
    %11 = vector.load %arg5[%c0_9, %c0_10] : memref<8x128xf32, #tpu.memory_space<vmem>>, vector<8x128xf32>
    tpu.vector_store %arg5[%c0_9, %c0_10], %10 {strides = array<i32>} : memref<8x128xf32, #tpu.memory_space<vmem>>, vector<8x128xf32>,
    return
  }
  func.func @transform_0(%arg0: i32) -> (i32, i32) {
    %c0_i32 = arith.constant 0 : i32
    %c0_i32_0 = arith.constant 0 : i32
    return %arg0, %c0_i32 : i32, i32
  }
  func.func @transform_1(%arg0: i32) -> (i32, i32) {
    %c0_i32 = arith.constant 0 : i32
    %c0_i32_0 = arith.constant 0 : i32
    %c0_i32_1 = arith.constant 0 : i32
    return %c0_i32, %c0_i32_0 : i32, i32
  }
  func.func @transform_2(%arg0: i32) -> (i32, i32) {
    %c0_i32 = arith.constant 0 : i32
    %c0_i32_0 = arith.constant 0 : i32
    %c0_i32_1 = arith.constant 0 : i32
    return %c0_i32, %c0_i32_0 : i32, i32
  }
  func.func @transform_3(%arg0: i32) -> (i32, i32) {
    %c0_i32 = arith.constant 0 : i32
    %c0_i32_0 = arith.constant 0 : i32
    %c0_i32_1 = arith.constant 0 : i32
    return %c0_i32, %c0_i32_0 : i32, i32
  }
  func.func @transform_4(%arg0: i32) -> (i32, i32) {
    %c0_i32 = arith.constant 0 : i32
    %c0_i32_0 = arith.constant 0 : i32
    return %arg0, %c0_i32 : i32, i32
  }
}

</mosaic_0001>

<bundles_post_ra>
// kernel: res_linear_prepared.1
= control target key start
LH: loop header
LB: loop body
LE: loop exit
PB: predicated region body
PF: predicated region fallthrough
CT: control target
= control target key end

     0   :  { %9 = vsyncpa [#allocation3], 0  ;;  %s2956_s0 = inlined_call_operand.vmem [shape: f32[8,128], index: 0, kind: input, shape index: {}]   ;;  %s2957_s1 = inlined_call_operand.hbm [shape: f32[128,128], index: 1, kind: input, shape index: {}]   ;;  %s2958_s2 = inlined_call_operand.vmem [shape: f32[1,128], index: 2, kind: input, shape index: {}]   ;;  %s2959_s3 = inlined_call_operand.hbm [shape: f32[128,128], index: 3, kind: input, shape index: {}]   ;;  %s2960_s4 = inlined_call_operand.hbm [shape: f32[8,128], index: 4, kind: output, shape index: {}]  }
   0x1   :  { %10 = vsyncpa [#allocation6], 0 }
   0x2   :  { %11 = vsyncpa [#allocation4], 0  ;;  %s2401_s15 = smov [#allocation2]   ;;  %s2329_s19 = scalar_lea.hbm %s2957_s1, 2048 }
   0x3   :  { %s19_s16 = sshll.u32 %s2401_s15, 4  ;;  %p2330_p0 = scmp.ne.s32.totalorder %s2957_s1, %s2329_s19  ;;  %s20_s16 = int_to_ptr.vmem [resolvable:$true] %s19_s16 }
   0x4   :  { %p2333_p1 = scmp.lt.u32.totalorder %s2329_s19, %s2957_s1 }
   0x6   :  { %p2335_p2 = pnand %p2333_p1, %p2330_p0 }
   0x8   :  { %2338 = shalt.err (!%p2335_p2)
}
   0x9   :  { %s2339_s24 = scalar_lea.vmem %s20_s16, 2048  ;;  %p2344_p4 = scmp.lt.s32.totalorder %s20_s16, %s20_s16 }
   0xa   :  { %p2340_p3 = scmp.ne.s32.totalorder %s20_s16, %s2339_s24  ;;  %p2345_p5 = scmp.lt.s32.totalorder %s2339_s24, %s2339_s24 }
   0xc   :  { %p2346_p6 = por %p2345_p5, %p2344_p4 }
   0xe   :  { %p2347_p7 = pnand %p2346_p6, %p2340_p3 }
  0x10   :  { %2350 = shalt.err (!%p2347_p7)
}
  0x11   :  { %s2402_s25 = smov 128   ;;  %s2403_s26 = smov 8  }
  0x12   :  { %25 = dma.hbm_to_vmem [thread:$0]  %s2957_s1, 2048, %s20_s16, [#allocation3], %s2402_s25, %s2402_s25, %s2403_s26  }
  0x13   :  { %s2404_s29 = smov [#allocation5]   ;;  %s2351_s7 = scalar_lea.hbm %s2959_s3, 2048 }
  0x14   :  { %s33_s30 = sshll.u32 %s2404_s29, 4  ;;  %p2352_p8 = scmp.ne.s32.totalorder %s2959_s3, %s2351_s7  ;;  %s34_s30 = int_to_ptr.vmem [resolvable:$true] %s33_s30 }
  0x15   :  { %p2355_p9 = scmp.lt.u32.totalorder %s2351_s7, %s2959_s3 }
  0x17   :  { %p2357_p10 = pnand %p2355_p9, %p2352_p8 }
  0x19   :  { %2360 = shalt.err (!%p2357_p10)
}
  0x1a   :  { %s2361_s12 = scalar_lea.vmem %s34_s30, 2048  ;;  %p2366_p12 = scmp.lt.s32.totalorder %s34_s30, %s34_s30 }
  0x1b   :  { %p2362_p11 = scmp.ne.s32.totalorder %s34_s30, %s2361_s12  ;;  %p2367_p13 = scmp.lt.s32.totalorder %s2361_s12, %s2361_s12 }
  0x1d   :  { %p2368_p0 = por %p2367_p13, %p2366_p12 }
  0x1f   :  { %p2369_p1 = pnand %p2368_p0, %p2362_p11 }
  0x21   :  { %2372 = shalt.err (!%p2369_p1)
}
  0x22   :  { %39 = dma.hbm_to_vmem [thread:$0]  %s2959_s3, 2048, %s34_s30, [#allocation6], %s2402_s25, %s2402_s25, %s2403_s26  }
  0x23   :  { %2395 = dma.done.wait [#allocation3], 2048  }
  0x24   :  { %2396 = vsyncadd [#allocation3], 4294965248 }
  0x25   :  { %2397 = dma.done.wait [#allocation6], 2048  }
  0x26   :  { %2398 = vsyncadd [#allocation6], 4294965248  ;;  %v2405_v0 = vmov 0.0|0.0   ;;  %vm2406_vm0 = vmmov 0   ;;  %v2407_v1 = vmov 0.0   ;;  %v47_v2 = vld [vmem:[#allocation2] sm:$0xff] }
  0x27   :  { %2011 = vmatprep.subr.bf16.mxu0 %v2405_v0  ;;  %1623 = vmatprep.mubr.msk.f32.mxu0 %vm2406_vm0, %v2407_v1  ;;  %v48_v3 = vld [vmem:[#allocation2 + $0x8] sm:$0xff]  ;;  %v49_v4 = vld [vmem:[#allocation2 + $0x10] sm:$0xff]  ;;  %v71_v5 = vand.u32 4294901760, %v47_v2  ;;  %v50_v7 = vld [vmem:[#allocation2 + $0x18] sm:$0xff] }
  0x28   :  { %2155 = vmatprep.subr.bf16.mxu1 %v2405_v0  ;;  %1833 = vmatprep.mubr.msk.f32.mxu1 %vm2406_vm0, %v2407_v1  ;;  %v74_v6 = vand.u32 4294901760, %v48_v3  ;;  %v77_v8 = vand.u32 4294901760, %v49_v4  ;;  %v80_v9 = vand.u32 4294901760, %v50_v7  ;;  %v51_v10 = vld [vmem:[#allocation2 + $0x20] sm:$0xff]  ;;  %v52_v11 = vld [vmem:[#allocation2 + $0x28] sm:$0xff]  ;;  %v53_v16 = vld [vmem:[#allocation2 + $0x30] sm:$0xff] }
  0x29   :  { %v83_v14 = vand.u32 4294901760, %v51_v10  ;;  %v86_v15 = vand.u32 4294901760, %v52_v11  ;;  %v54_v17 = vld [vmem:[#allocation2 + $0x38] sm:$0xff]  ;;  %v89_v19 = vand.u32 4294901760, %v53_v16  ;;  %v55_v21 = vld [vmem:[#allocation2 + $0x40] sm:$0xff]  ;;  %v56_v22 = vld [vmem:[#allocation2 + $0x48] sm:$0xff]  ;;  %v2477_v24 = vsub.f32 %v47_v2, %v71_v5 }
  0x2a   :  { %v2464_v12 = vpack.c.bf16 %v74_v6, %v71_v5  ;;  %v2467_v13 = vpack.c.bf16 %v80_v9, %v77_v8  ;;  %v92_v20 = vand.u32 4294901760, %v54_v17  ;;  %v46_v23 = vld [vmem:[%s2956_s0] sm:$0xff]  ;;  %v2479_v25 = vsub.f32 %v48_v3, %v74_v6  ;;  %v57_v29 = vld [vmem:[#allocation2 + $0x50] sm:$0xff]  ;;  %v59_v32 = vld [vmem:[#allocation2 + $0x60] sm:$0xff] }
  0x2b   :  { %v2471_v18 = vpack.c.bf16 %v86_v15, %v83_v14  ;;  %v95_v27 = vand.u32 4294901760, %v55_v21  ;;  %v98_v28 = vand.u32 4294901760, %v56_v22  ;;  %v58_v30 = vld [vmem:[#allocation2 + $0x58] sm:$0xff]  ;;  %v2485_v31 = vand.u32 4294901760, %v46_v23  ;;  %v60_v35 = vld [vmem:[#allocation2 + $0x68] sm:$0xff]  ;;  %v61_v36 = vld [vmem:[#allocation2 + $0x70] sm:$0xff] }
  0x2c   :  { %2013 = vmatpush3.bf16.msra.mxu0 %v2464_v12  ;;  %v2482_v26 = vpack.c.bf16 %v92_v20, %v89_v19  ;;  %v2487_v33 = vsub.f32 %v49_v4, %v77_v8  ;;  %v101_v34 = vand.u32 4294901760, %v57_v29  ;;  %v62_v37 = vld [vmem:[#allocation2 + $0x78] sm:$0xff]  ;;  %v104_v39 = vand.u32 4294901760, %v58_v30 }
  0x2d   :  { %2014 = vmatprep.subr.bf16.mxu0 %v2405_v0  ;;  %v2490_v38 = vpack.c.bf16 %v98_v28, %v95_v27  ;;  %v164_v40 = vand.u32 4294901760, %v2477_v24  ;;  %v171_v41 = vand.u32 4294901760, %v2479_v25  ;;  %v2494_v42 = vsub.f32 %v50_v7, %v80_v9 }
  0x2e   :  { %v2496_v43 = vsub.f32 %v51_v10, %v83_v14  ;;  %v2498_v44 = vsub.f32 %v52_v11, %v86_v15  ;;  %v2502_v45 = vsub.f32 %v46_v23, %v2485_v31  ;;  %v107_v46 = vand.u32 4294901760, %v59_v32 }
  0x2f   :  { %v110_v47 = vand.u32 4294901760, %v60_v35  ;;  %v113_v48 = vand.u32 4294901760, %v61_v36  ;;  %v116_v49 = vand.u32 4294901760, %v62_v37  ;;  %v2504_v50 = vsub.f32 %v53_v16, %v89_v19 }
  0x30   :  { %2016 = vmatpush3.bf16.msra.mxu0 %v2467_v13  ;;  %v2506_v51 = vsub.f32 %v54_v17, %v92_v20  ;;  %v2508_v52 = vsub.f32 %v55_v21, %v95_v27  ;;  %v178_v53 = vand.u32 4294901760, %v2487_v33  ;;  %v2512_v54 = vsub.f32 %v56_v22, %v98_v28 }
  0x31   :  { %2017 = vmatprep.subr.bf16.mxu0 %v2405_v0  ;;  %v2514_v55 = vpack.c.bf16 %v104_v39, %v101_v34  ;;  %v165_v56 = vsub.f32 %v2477_v24, %v164_v40  ;;  %v172_v57 = vsub.f32 %v2479_v25, %v171_v41  ;;  %v2519_v58 = vsub.f32 %v57_v29, %v101_v34 }
  0x32   :  { %v2521_v59 = vsub.f32 %v58_v30, %v104_v39  ;;  %v2523_v60 = vsub.f32 %v59_v32, %v107_v46  ;;  %v153_v61 = vand.u32 4294901760, %v2502_v45  ;;  %v2526_v62 = vpack.c.bf16 %v110_v47, %v107_v46 }
  0x33   :  { %v2528_v63 = vsub.f32 %v60_v35, %v110_v47  ;;  %v2530_v2 = vpack.c.bf16 %v116_v49, %v113_v48  ;;  %v2532_v3 = vsub.f32 %v61_v36, %v113_v48  ;;  %v2534_v4 = vsub.f32 %v62_v37, %v116_v49 }
  0x34   :  { %2019 = vmatpush3.bf16.msra.mxu0 %v2471_v18  ;;  %v179_v5 = vsub.f32 %v2487_v33, %v178_v53  ;;  %v185_v6 = vand.u32 4294901760, %v2494_v42  ;;  %v192_v7 = vand.u32 4294901760, %v2496_v43  ;;  %v166_v8 = vand.u32 4294901760, %v165_v56 }
  0x35   :  { %2020 = vmatprep.subr.bf16.mxu0 %v2405_v0  ;;  %v173_v9 = vand.u32 4294901760, %v172_v57  ;;  %v199_v10 = vand.u32 4294901760, %v2498_v44  ;;  %v206_v11 = vand.u32 4294901760, %v2504_v50  ;;  %v154_v14 = vsub.f32 %v2502_v45, %v153_v61 }
  0x36   :  { %v213_v15 = vand.u32 4294901760, %v2506_v51  ;;  %v220_v16 = vand.u32 4294901760, %v2508_v52  ;;  %v227_v17 = vand.u32 4294901760, %v2512_v54  ;;  %v234_v19 = vand.u32 4294901760, %v2519_v58 }
  0x37   :  { %v241_v20 = vand.u32 4294901760, %v2521_v59  ;;  %v248_v21 = vand.u32 4294901760, %v2523_v60  ;;  %v255_v22 = vand.u32 4294901760, %v2528_v63  ;;  %v262_v23 = vand.u32 4294901760, %v2532_v3 }
  0x38   :  { %2022 = vmatpush3.bf16.msra.mxu0 %v2482_v26  ;;  %v269_v27 = vand.u32 4294901760, %v2534_v4  ;;  %v2555_v28 = vpack.c.bf16 %v171_v41, %v164_v40  ;;  %v2557_v29 = vpack.c.bf16 %v185_v6, %v178_v53  ;;  %v186_v30 = vsub.f32 %v2494_v42, %v185_v6 }
  0x39   :  { %2023 = vmatprep.subr.bf16.mxu0 %v2405_v0  ;;  %v2561_v32 = vpack.c.bf16 %v199_v10, %v192_v7  ;;  %v2563_v34 = vpack.c.bf16 %v213_v15, %v206_v11  ;;  %v2565_v35 = vpack.c.bf16 %v227_v17, %v220_v16  ;;  %v2568_v36 = vpack.c.bf16 %v241_v20, %v234_v19 }
  0x3a   :  { %v2570_v37 = vpack.c.bf16 %v255_v22, %v248_v21  ;;  %v2572_v39 = vpack.c.bf16 %v269_v27, %v262_v23  ;;  %v155_v40 = vand.u32 4294901760, %v154_v14  ;;  %v180_v41 = vand.u32 4294901760, %v179_v5 }
  0x3b   :  { %v2036_v46 = vpack.c.bf16 %v173_v9, %v166_v8  ;;  %v187_v47 = vand.u32 4294901760, %v186_v30  ;;  %v193_v48 = vsub.f32 %v2496_v43, %v192_v7  ;;  %v200_v49 = vsub.f32 %v2498_v44, %v199_v10 }
  0x3c   :  { %2025 = vmatpush3.bf16.msra.mxu0 %v2490_v38  ;;  %v207_v53 = vsub.f32 %v2504_v50, %v206_v11  ;;  %v214_v14 = vsub.f32 %v2506_v51, %v213_v15  ;;  %v221_v5 = vsub.f32 %v2508_v52, %v220_v16  ;;  %v228_v10 = vsub.f32 %v2512_v54, %v227_v17 }
  0x3d   :  { %2026 = vmatprep.subr.bf16.mxu0 %v2405_v0  ;;  %v2039_v56 = vpack.c.bf16 %v187_v47, %v180_v41  ;;  %v194_v57 = vand.u32 4294901760, %v193_v48  ;;  %v201_v6 = vand.u32 4294901760, %v200_v49  ;;  %v235_v15 = vsub.f32 %v2519_v58, %v234_v19 }
  0x3e   :  { %v208_v8 = vand.u32 4294901760, %v207_v53  ;;  %v215_v9 = vand.u32 4294901760, %v214_v14  ;;  %v222_v11 = vand.u32 4294901760, %v221_v5  ;;  %v242_v41 = vsub.f32 %v2521_v59, %v241_v20  ;;  %v714_v5 = vld [vmem:[#allocation5 + $0x10] sm:$0xff] }
  0x3f   :  { %v2042_v7 = vpack.c.bf16 %v201_v6, %v194_v57  ;;  %v249_v16 = vsub.f32 %v2523_v60, %v248_v21  ;;  %v236_v47 = vand.u32 4294901760, %v235_v15  ;;  %v256_v17 = vsub.f32 %v2528_v63, %v255_v22 }
  0x40   :  { %2028 = vmatpush3.bf16.msra.mxu0 %v2514_v55  ;;  %v2045_v30 = vpack.c.bf16 %v215_v9, %v208_v8  ;;  %v243_v48 = vand.u32 4294901760, %v242_v41  ;;  %v263_v19 = vsub.f32 %v2532_v3, %v262_v23  ;;  %v270_v20 = vsub.f32 %v2534_v4, %v269_v27  ;;  %v712_v23 = vld [vmem:[#allocation5] sm:$0xff]  ;;  %v713_v27 = vld [vmem:[#allocation5 + $0x8] sm:$0xff]  ;;  %v718_v41 = vld [vmem:[#allocation5 + $0x30] sm:$0xff] }
  0x41   :  { %2029 = vmatprep.subr.bf16.mxu0 %v2405_v0  ;;  %v250_v49 = vand.u32 4294901760, %v249_v16  ;;  %v2060_v14 = vpack.c.bf16 %v2479_v25, %v2477_v24  ;;  %v729_v8 = vand.u32 4294901760, %v712_v23  ;;  %v732_v9 = vand.u32 4294901760, %v713_v27  ;;  %v717_v24 = vld [vmem:[#allocation5 + $0x28] sm:$0xff]  ;;  %v719_v16 = vld [vmem:[#allocation5 + $0x38] sm:$0xff] }
  0x42   :  { %v2051_v53 = vpack.c.bf16 %v243_v48, %v236_v47  ;;  %v264_v57 = vand.u32 4294901760, %v263_v19  ;;  %v271_v6 = vand.u32 4294901760, %v270_v20  ;;  %v744_v15 = vand.u32 4294901760, %v717_v24 }
  0x43   :  { %v2606_v47 = vpack.c.bf16 %v732_v9, %v729_v8 }
  0x44   :  { %2031 = vmatpush3.bf16.msra.mxu0 %v2526_v62  ;;  %v2057_v22 = vpack.c.bf16 %v271_v6, %v264_v57  ;;  %v2623_v20 = vsub.f32 %v717_v24, %v744_v15  ;;  %v750_v57 = vand.u32 4294901760, %v719_v16 }
  0x45   :  { %2032 = vmatprep.subr.bf16.mxu0 %v2405_v0  ;;  %2157 = vmatpush3.bf16.msra.mxu1 %v2606_v47 }
  0x46   :  { %2158 = vmatprep.subr.bf16.mxu1 %v2405_v0 }
  0x48   :  { %2034 = vmatpush3.bf16.msra.mxu0 %v2530_v2 }
  0x49   :  { %2035 = vmatprep.subr.bf16.mxu0 %v2405_v0 }
  0x4b   :  { %1624 = vmatmul.mubr.f32.vlgmr.msra.gmra.mrb[0].mxu0 %v155_v40  ;;  %v229_v40 = vand.u32 4294901760, %v228_v10  ;;  %v715_v10 = vld [vmem:[#allocation5 + $0x18] sm:$0xff] }
  0x4c   :  { %2037 = vmatpush3.bf16.msra.mxu0 %v2036_v46  ;;  %1658 = vmatprep.mubr.msk.f32.mxu0 %vm2406_vm0, %v2407_v1  ;;  %v738_v25 = vand.u32 4294901760, %v715_v10 }
  0x4d   :  { %2038 = vmatprep.subr.bf16.mxu0 %v2405_v0  ;;  %v2048_v46 = vpack.c.bf16 %v229_v40, %v222_v11  ;;  %v735_v11 = vand.u32 4294901760, %v714_v5 }
  0x4f   :  { %v2612_v48 = vsub.f32 %v714_v5, %v735_v11 }
  0x50   :  { %2040 = vmatpush3.bf16.msra.mxu0 %v2039_v56  ;;  %v257_v56 = vand.u32 4294901760, %v256_v17  ;;  %v721_v17 = vld [vmem:[#allocation5 + $0x48] sm:$0xff] }
  0x51   :  { %2041 = vmatprep.subr.bf16.mxu0 %v2405_v0 }
  0x52   :  { %v2054_v21 = vpack.c.bf16 %v257_v56, %v250_v49  ;;  %v2066_v49 = vpack.c.bf16 %v2498_v44, %v2496_v43  ;;  %v2618_v56 = vsub.f32 %v715_v10, %v738_v25  ;;  %v2629_v44 = vsub.f32 %v719_v16, %v750_v57 }
  0x53   :  { %v836_v10 = vand.u32 4294901760, %v2612_v48 }
  0x54   :  { %2043 = vmatpush3.bf16.msra.mxu0 %v2042_v7  ;;  %v2063_v7 = vpack.c.bf16 %v2494_v42, %v2487_v33  ;;  %v2608_v33 = vsub.f32 %v712_v23, %v729_v8  ;;  %v2610_v42 = vsub.f32 %v713_v27, %v732_v9  ;;  %v2069_v27 = vpack.c.bf16 %v2506_v51, %v2504_v50 }
  0x55   :  { %2044 = vmatprep.subr.bf16.mxu0 %v2405_v0  ;;  %v2075_v50 = vpack.c.bf16 %v2521_v59, %v2519_v58  ;;  %v725_v58 = vld [vmem:[#allocation5 + $0x68] sm:$0xff]  ;;  %v837_v24 = vsub.f32 %v2612_v48, %v836_v10 }
  0x56   :  { %v768_v59 = vand.u32 4294901760, %v725_v58 }
  0x58   :  { %2046 = vmatpush3.bf16.msra.mxu0 %v2045_v30  ;;  %v716_v30 = vld [vmem:[#allocation5 + $0x20] sm:$0xff] }
  0x59   :  { %2047 = vmatprep.subr.bf16.mxu0 %v2405_v0  ;;  %v741_v40 = vand.u32 4294901760, %v716_v30 }
  0x5b   :  { %v2620_v19 = vsub.f32 %v716_v30, %v741_v40  ;;  %v2638_v5 = vpack.c.bf16 %v744_v15, %v741_v40  ;;  %v838_v15 = vand.u32 4294901760, %v837_v24 }
  0x5c   :  { %2049 = vmatpush3.bf16.msra.mxu0 %v2048_v46  ;;  %v720_v46 = vld [vmem:[#allocation5 + $0x40] sm:$0xff] }
  0x5d   :  { %2050 = vmatprep.subr.bf16.mxu0 %v2405_v0  ;;  %v753_v6 = vand.u32 4294901760, %v720_v46  ;;  %v850_v16 = vand.u32 4294901760, %v2620_v19 }
  0x60   :  { %2052 = vmatpush3.bf16.msra.mxu0 %v2051_v53  ;;  %v2616_v53 = vpack.c.bf16 %v738_v25, %v735_v11  ;;  %v843_v11 = vand.u32 4294901760, %v2618_v56 }
  0x61   :  { %2053 = vmatprep.subr.bf16.mxu0 %v2405_v0 }
  0x62   :  { %2160 = vmatpush3.bf16.msra.mxu1 %v2616_v53  ;;  %v844_v25 = vsub.f32 %v2618_v56, %v843_v11 }
  0x63   :  { %2161 = vmatprep.subr.bf16.mxu1 %v2405_v0 }
  0x64   :  { %2055 = vmatpush3.bf16.msra.mxu0 %v2054_v21  ;;  %v747_v21 = vand.u32 4294901760, %v718_v41 }
  0x65   :  { %2056 = vmatprep.subr.bf16.mxu0 %v2405_v0 }
  0x66   :  { %v2627_v43 = vsub.f32 %v718_v41, %v747_v21  ;;  %2163 = vmatpush3.bf16.msra.mxu1 %v2638_v5  ;;  %v2645_v8 = vpack.c.bf16 %v750_v57, %v747_v21  ;;  %v845_v41 = vand.u32 4294901760, %v844_v25 }
  0x67   :  { %2164 = vmatprep.subr.bf16.mxu1 %v2405_v0 }
  0x68   :  { %2058 = vmatpush3.bf16.msra.mxu0 %v2057_v22  ;;  %v756_v22 = vand.u32 4294901760, %v721_v17 }
  0x69   :  { %2059 = vmatprep.subr.bf16.mxu0 %v2405_v0 }
  0x6a   :  { %v2633_v23 = vsub.f32 %v721_v17, %v756_v22  ;;  %2166 = vmatpush3.bf16.msra.mxu1 %v2645_v8  ;;  %v2652_v51 = vpack.c.bf16 %v756_v22, %v753_v6  ;;  %v2183_v17 = vpack.c.bf16 %v845_v41, %v838_v15  ;;  %v864_v22 = vand.u32 4294901760, %v2627_v43 }
  0x6b   :  { %1659 = vmatmul.mubr.f32.vlgmr.msra.gmra.mrb[0].mxu0 %v2485_v31  ;;  %2167 = vmatprep.subr.bf16.mxu1 %v2405_v0 }
  0x6c   :  { %2061 = vmatpush3.bf16.msra.mxu0 %v2060_v14  ;;  %1693 = vmatprep.mubr.msk.f32.mxu0 %vm2406_vm0, %v2407_v1  ;;  %v2631_v14 = vsub.f32 %v720_v46, %v753_v6  ;;  %v857_v46 = vand.u32 4294901760, %v2623_v20 }
  0x6d   :  { %2062 = vmatprep.subr.bf16.mxu0 %v2405_v0 }
  0x6e   :  { %2169 = vmatpush3.bf16.msra.mxu1 %v2652_v51  ;;  %v858_v21 = vsub.f32 %v2623_v20, %v857_v46 }
  0x6f   :  { %2170 = vmatprep.subr.bf16.mxu1 %v2405_v0 }
  0x70   :  { %2064 = vmatpush3.bf16.msra.mxu0 %v2063_v7  ;;  %v2072_v7 = vpack.c.bf16 %v2512_v54, %v2508_v52  ;;  %v2078_v52 = vpack.c.bf16 %v2528_v63, %v2523_v60  ;;  %v2081_v54 = vpack.c.bf16 %v2534_v4, %v2532_v3  ;;  %v2736_v3 = vsub.f32 %v725_v58, %v768_v59 }
  0x71   :  { %2065 = vmatprep.subr.bf16.mxu0 %v2405_v0  ;;  %v859_v6 = vand.u32 4294901760, %v858_v21 }
  0x72   :  { %v2963_v24 = vand.u32 4294901760, %v2736_v3 }
  0x74   :  { %2067 = vmatpush3.bf16.msra.mxu0 %v2066_v49  ;;  %v851_v49 = vsub.f32 %v2620_v19, %v850_v16  ;;  %v914_v41 = vsub.f32 %v2736_v3, %v2963_v24 }
  0x75   :  { %2068 = vmatprep.subr.bf16.mxu0 %v2405_v0 }
  0x76   :  { %v852_v57 = vand.u32 4294901760, %v851_v49  ;;  %v915_v21 = vand.u32 4294901760, %v914_v41 }
  0x78   :  { %2070 = vmatpush3.bf16.msra.mxu0 %v2069_v27  ;;  %v871_v27 = vand.u32 4294901760, %v2629_v44 }
  0x79   :  { %2071 = vmatprep.subr.bf16.mxu0 %v2405_v0 }
  0x7c   :  { %2073 = vmatpush3.bf16.msra.mxu0 %v2072_v7  ;;  %v2186_v7 = vpack.c.bf16 %v859_v6, %v852_v57 }
  0x7d   :  { %2074 = vmatprep.subr.bf16.mxu0 %v2405_v0 }
  0x80   :  { %2076 = vmatpush3.bf16.msra.mxu0 %v2075_v50  ;;  %v865_v50 = vsub.f32 %v2627_v43, %v864_v22 }
  0x81   :  { %2077 = vmatprep.subr.bf16.mxu0 %v2405_v0 }
  0x84   :  { %2079 = vmatpush3.bf16.msra.mxu0 %v2078_v52  ;;  %v872_v52 = vsub.f32 %v2629_v44, %v871_v27 }
  0x85   :  { %2080 = vmatprep.subr.bf16.mxu0 %v2405_v0 }
  0x88   :  { %2082 = vmatpush3.bf16.msra.mxu0 %v2081_v54  ;;  %v866_v54 = vand.u32 4294901760, %v865_v50 }
  0x89   :  { %2083 = vmatprep.subr.bf16.mxu0 %v2405_v0 }
  0x8b   :  { %1694 = vmatmul.mubr.f32.vlgmr.msra.gmra.mrb[0].mxu0 %v2502_v45 }
  0x8c   :  { %2085 = vmatpush3.bf16.msra.mxu0 %v2464_v12  ;;  %1728 = vmatprep.mubr.msk.f32.mxu0 %vm2406_vm0, %v2407_v1 }
  0x8d   :  { %2086 = vmatprep.subr.bf16.mxu0 %v2405_v0 }
  0x90   :  { %2088 = vmatpush3.bf16.msra.mxu0 %v2467_v13 }
  0x91   :  { %2089 = vmatprep.subr.bf16.mxu0 %v2405_v0 }
  0x94   :  { %2091 = vmatpush3.bf16.msra.mxu0 %v2471_v18 }
  0x95   :  { %2092 = vmatprep.subr.bf16.mxu0 %v2405_v0 }
  0x98   :  { %2094 = vmatpush3.bf16.msra.mxu0 %v2482_v26 }
  0x99   :  { %2095 = vmatprep.subr.bf16.mxu0 %v2405_v0 }
  0x9c   :  { %2097 = vmatpush3.bf16.msra.mxu0 %v2490_v38 }
  0x9d   :  { %2098 = vmatprep.subr.bf16.mxu0 %v2405_v0 }
  0xa0   :  { %2100 = vmatpush3.bf16.msra.mxu0 %v2514_v55 }
  0xa1   :  { %2101 = vmatprep.subr.bf16.mxu0 %v2405_v0 }
  0xa4   :  { %2103 = vmatpush3.bf16.msra.mxu0 %v2526_v62 }
  0xa5   :  { %2104 = vmatprep.subr.bf16.mxu0 %v2405_v0 }
  0xa8   :  { %2106 = vmatpush3.bf16.msra.mxu0 %v2530_v2 }
  0xa9   :  { %2107 = vmatprep.subr.bf16.mxu0 %v2405_v0 }
  0xab   :  { %1729 = vmatmul.mubr.f32.vlgmr.msra.gmra.mrb[0].mxu0 %v153_v61  ;;  %v726_v61 = vld [vmem:[#allocation5 + $0x70] sm:$0xff] }
  0xac   :  { %2109 = vmatpush3.bf16.msra.mxu0 %v2555_v28  ;;  %1763 = vmatprep.mubr.msk.f32.mxu0 %vm2406_vm0, %v2407_v1  ;;  %v771_v4 = vand.u32 4294901760, %v726_v61 }
  0xad   :  { %2110 = vmatprep.subr.bf16.mxu0 %v2405_v0 }
  0xb0   :  { %2112 = vmatpush3.bf16.msra.mxu0 %v2557_v29  ;;  %v822_v29 = vand.u32 4294901760, %v2608_v33 }
  0xb1   :  { %2113 = vmatprep.subr.bf16.mxu0 %v2405_v0 }
  0xb4   :  { %2115 = vmatpush3.bf16.msra.mxu0 %v2561_v32  ;;  %v829_v32 = vand.u32 4294901760, %v2610_v42 }
  0xb5   :  { %2116 = vmatprep.subr.bf16.mxu0 %v2405_v0 }
  0xb8   :  { %2118 = vmatpush3.bf16.msra.mxu0 %v2563_v34 }
  0xb9   :  { %2119 = vmatprep.subr.bf16.mxu0 %v2405_v0 }
  0xbc   :  { %2121 = vmatpush3.bf16.msra.mxu0 %v2565_v35  ;;  %v2743_v35 = vsub.f32 %v726_v61, %v771_v4 }
  0xbd   :  { %2122 = vmatprep.subr.bf16.mxu0 %v2405_v0 }
  0xbe   :  { %v2962_v57 = vand.u32 4294901760, %v2743_v35 }
  0xc0   :  { %2124 = vmatpush3.bf16.msra.mxu0 %v2568_v36 }
  0xc1   :  { %2125 = vmatprep.subr.bf16.mxu0 %v2405_v0 }
  0xc4   :  { %2127 = vmatpush3.bf16.msra.mxu0 %v2570_v37  ;;  %v823_v37 = vsub.f32 %v2608_v33, %v822_v29 }
  0xc5   :  { %2128 = vmatprep.subr.bf16.mxu0 %v2405_v0 }
  0xc6   :  { %v824_v9 = vand.u32 4294901760, %v823_v37 }
  0xc8   :  { %2130 = vmatpush3.bf16.msra.mxu0 %v2572_v39  ;;  %v830_v39 = vsub.f32 %v2610_v42, %v829_v32 }
  0xc9   :  { %2131 = vmatprep.subr.bf16.mxu0 %v2405_v0 }
  0xca   :  { %v831_v30 = vand.u32 4294901760, %v830_v39 }
  0xcb   :  { %1764 = vmatmul.mubr.f32.vlgmr.msra.gmra.mrb[0].mxu0 %v2485_v31 }
  0xcc   :  { %2133 = vmatpush3.bf16.msra.mxu0 %v2464_v12  ;;  %1798 = vmatprep.mubr.msk.f32.mxu0 %vm2406_vm0, %v2407_v1  ;;  %v722_v12 = vld [vmem:[#allocation5 + $0x50] sm:$0xff]  ;;  %v2763_v40 = vpack.c.bf16 %v831_v30, %v824_v9 }
  0xcd   :  { %2134 = vmatprep.subr.bf16.mxu0 %v2405_v0 }
  0xd0   :  { %2136 = vmatpush3.bf16.msra.mxu0 %v2467_v13  ;;  %v723_v13 = vld [vmem:[#allocation5 + $0x58] sm:$0xff] }
  0xd1   :  { %2137 = vmatprep.subr.bf16.mxu0 %v2405_v0 }
  0xd4   :  { %2139 = vmatpush3.bf16.msra.mxu0 %v2471_v18  ;;  %v759_v18 = vand.u32 4294901760, %v722_v12 }
  0xd5   :  { %2140 = vmatprep.subr.bf16.mxu0 %v2405_v0 }
  0xd6   :  { %v2729_v63 = vsub.f32 %v722_v12, %v759_v18  ;;  %v873_v12 = vand.u32 4294901760, %v872_v52  ;;  %v921_v52 = vsub.f32 %v2743_v35, %v2962_v57 }
  0xd8   :  { %2142 = vmatpush3.bf16.msra.mxu0 %v2482_v26  ;;  %v762_v26 = vand.u32 4294901760, %v723_v13  ;;  %v892_v61 = vand.u32 4294901760, %v2729_v63 }
  0xd9   :  { %2143 = vmatprep.subr.bf16.mxu0 %v2405_v0 }
  0xda   :  { %v2723_v45 = vpack.c.bf16 %v762_v26, %v759_v18  ;;  %v885_v18 = vand.u32 4294901760, %v2633_v23 }
  0xdc   :  { %2145 = vmatpush3.bf16.msra.mxu0 %v2490_v38  ;;  %v724_v38 = vld [vmem:[#allocation5 + $0x60] sm:$0xff]  ;;  %2172 = vmatpush3.bf16.msra.mxu1 %v2723_v45  ;;  %v886_v58 = vsub.f32 %v2633_v23, %v885_v18 }
  0xdd   :  { %2146 = vmatprep.subr.bf16.mxu0 %v2405_v0  ;;  %2173 = vmatprep.subr.bf16.mxu1 %v2405_v0 }
  0xe0   :  { %2148 = vmatpush3.bf16.msra.mxu0 %v2514_v55  ;;  %v765_v55 = vand.u32 4294901760, %v724_v38 }
  0xe1   :  { %2149 = vmatprep.subr.bf16.mxu0 %v2405_v0 }
  0xe2   :  { %v2727_v60 = vpack.c.bf16 %v768_v59, %v765_v55  ;;  %v887_v59 = vand.u32 4294901760, %v886_v58 }
  0xe4   :  { %2151 = vmatpush3.bf16.msra.mxu0 %v2526_v62  ;;  %v727_v62 = vld [vmem:[#allocation5 + $0x78] sm:$0xff]  ;;  %2175 = vmatpush3.bf16.msra.mxu1 %v2727_v60 }
  0xe5   :  { %2152 = vmatprep.subr.bf16.mxu0 %v2405_v0  ;;  %2176 = vmatprep.subr.bf16.mxu1 %v2405_v0  ;;  %v774_v28 = vand.u32 4294901760, %v727_v62 }
  0xe7   :  { %v2741_v34 = vpack.c.bf16 %v774_v28, %v771_v4  ;;  %v2745_v36 = vsub.f32 %v727_v62, %v774_v28  ;;  %v893_v28 = vsub.f32 %v2729_v63, %v892_v61 }
  0xe8   :  { %2154 = vmatpush3.bf16.msra.mxu0 %v2530_v2  ;;  %v2734_v2 = vsub.f32 %v724_v38, %v765_v55 }
  0xe9   :  { %2178 = vmatpush3.bf16.msra.mxu1 %v2741_v34  ;;  %v894_v39 = vand.u32 4294901760, %v893_v28  ;;  %v2961_v6 = vand.u32 4294901760, %v2745_v36  ;;  %v2210_v28 = vpack.c.bf16 %v2623_v20, %v2620_v19  ;;  %v2225_v41 = vpack.c.bf16 %v2745_v36, %v2743_v35 }
  0xea   :  { %2179 = vmatprep.subr.bf16.mxu1 %v2405_v0  ;;  %v2964_v30 = vand.u32 4294901760, %v2734_v2  ;;  %v2965_v19 = vand.u32 4294901760, %v2734_v2  ;;  %v2966_v20 = vand.u32 4294901760, %v2736_v3 }
  0xeb   :  { %1799 = vmatmul.mubr.f32.vlgmr.msra.gmra.mrb[0].mxu0 %v2485_v31  ;;  %v2731_v31 = vsub.f32 %v723_v13, %v762_v26  ;;  %v878_v13 = vand.u32 4294901760, %v2631_v14  ;;  %v2189_v26 = vpack.c.bf16 %v873_v12, %v866_v54  ;;  %v928_v54 = vsub.f32 %v2745_v36, %v2961_v6 }
  0xec   :  { %v907_v15 = vsub.f32 %v2734_v2, %v2964_v30  ;;  %v922_v12 = vand.u32 4294901760, %v921_v52 }
  0xed   :  { %v879_v38 = vsub.f32 %v2631_v14, %v878_v13  ;;  %v899_v62 = vand.u32 4294901760, %v2731_v31 }
  0xee   :  { %v908_v49 = vand.u32 4294901760, %v907_v15  ;;  %v2222_v15 = vpack.c.bf16 %v2736_v3, %v2734_v2 }
  0xef   :  { %v880_v55 = vand.u32 4294901760, %v879_v38  ;;  %v900_v37 = vsub.f32 %v2731_v31, %v899_v62  ;;  %v929_v38 = vand.u32 4294901760, %v928_v54 }
  0xf0   :  { %v2198_v50 = vpack.c.bf16 %v915_v21, %v908_v49  ;;  %v2832_v49 = vld [vmem:[%s2958_s2] ss:$0 sm:$0xff]  ;;  %s2408_s2 = smov [#allocation7]  }
  0xf1   :  { %v2192_v4 = vpack.c.bf16 %v887_v59, %v880_v55  ;;  %v901_v9 = vand.u32 4294901760, %v900_v37  ;;  %v2201_v58 = vpack.c.bf16 %v929_v38, %v922_v12  ;;  %v2204_v55 = vpack.c.bf16 %v2610_v42, %v2608_v33  ;;  %s1376_s16 = sshll.u32 %s2408_s2, 4  ;;  %s1377_s16 = int_to_ptr.vmem [resolvable:$true] %s1376_s16 }
  0xf2   :  { %v2207_v59 = vpack.c.bf16 %v2618_v56, %v2612_v48  ;;  %v2213_v37 = vpack.c.bf16 %v2629_v44, %v2627_v43  ;;  %v2258_v33 = vpack.c.bf16 %v857_v46, %v850_v16  ;;  %v2261_v42 = vpack.c.bf16 %v871_v27, %v864_v22  ;;  %s2373_s17 = scalar_lea.vmem %s1377_s16, 128  ;;  %p2378_p3 = scmp.lt.s32.totalorder %s1377_s16, %s1377_s16 }
  0xf3   :  { %v2195_v25 = vpack.c.bf16 %v901_v9, %v894_v39  ;;  %v2216_v39 = vpack.c.bf16 %v2633_v23, %v2631_v14  ;;  %v2219_v9 = vpack.c.bf16 %v2731_v31, %v2729_v63  ;;  %v2264_v48 = vpack.c.bf16 %v885_v18, %v878_v13  ;;  %p2374_p2 = scmp.ne.s32.totalorder %s1377_s16, %s2373_s17  ;;  %p2379_p4 = scmp.lt.s32.totalorder %s2373_s17, %s2373_s17 }
  0xf4   :  { %v2267_v56 = vpack.c.bf16 %v899_v62, %v892_v61  ;;  %v2270_v43 = vpack.c.bf16 %v2966_v20, %v2965_v19  ;;  %v2967_v44 = vand.u32 4294901760, %v2743_v35  ;;  %v2968_v14 = vand.u32 4294901760, %v2745_v36 }
  0xf5   :  { %p2380_p5 = por %p2379_p4, %p2378_p3 }
  0xf6   :  { %v2273_v23 = vpack.c.bf16 %v2968_v14, %v2967_v44 }
  0xf7   :  { %p2381_p6 = pnand %p2380_p5, %p2374_p2 }
 0x1be   :  { %v2834_v21 = vpop.f32.mrb[0].mxu0 }
 0x1bf   :  { %v2299_v52 = vadd.f32 %v2832_v49, %v2834_v21  ;;  %v1800_v54 = vpop.f32.mrb[1].mxu0 }
 0x1c1   :  { %v711_v12 = vmax.f32 %v2299_v52, 0.0 }
 0x1c3   :  { %v2838_v38 = vand.u32 4294901760, %v711_v12 }
 0x1c5   :  { %v810_v6 = vsub.f32 %v711_v12, %v2838_v38 }
 0x1c7   :  { %v811_v57 = vand.u32 4294901760, %v810_v6 }
 0x1c9   :  { %v812_v24 = vsub.f32 %v810_v6, %v811_v57 }
 0x1cb   :  { %v813_v30 = vand.u32 4294901760, %v812_v24 }
 0x1cd   :  { %1834 = vmatmul.mubr.f32.vlgmr.msra.gmra.mrb[0].mxu1 %v813_v30 }
 0x1ce   :  { %2181 = vmatpush3.bf16.msra.mxu1 %v2763_v40  ;;  %1868 = vmatprep.mubr.msk.f32.mxu1 %vm2406_vm0, %v2407_v1  ;;  %v2252_v40 = vpack.c.bf16 %v829_v32, %v822_v29 }
 0x1cf   :  { %2182 = vmatprep.subr.bf16.mxu1 %v2405_v0 }
 0x1d2   :  { %2184 = vmatpush3.bf16.msra.mxu1 %v2183_v17  ;;  %v2255_v17 = vpack.c.bf16 %v843_v11, %v836_v10 }
 0x1d3   :  { %2185 = vmatprep.subr.bf16.mxu1 %v2405_v0 }
 0x1d6   :  { %2187 = vmatpush3.bf16.msra.mxu1 %v2186_v7 }
 0x1d7   :  { %2188 = vmatprep.subr.bf16.mxu1 %v2405_v0 }
 0x1da   :  { %2190 = vmatpush3.bf16.msra.mxu1 %v2189_v26 }
 0x1db   :  { %2191 = vmatprep.subr.bf16.mxu1 %v2405_v0 }
 0x1de   :  { %2193 = vmatpush3.bf16.msra.mxu1 %v2192_v4 }
 0x1df   :  { %2194 = vmatprep.subr.bf16.mxu1 %v2405_v0 }
 0x1e2   :  { %2196 = vmatpush3.bf16.msra.mxu1 %v2195_v25 }
 0x1e3   :  { %2197 = vmatprep.subr.bf16.mxu1 %v2405_v0 }
 0x1e6   :  { %2199 = vmatpush3.bf16.msra.mxu1 %v2198_v50 }
 0x1e7   :  { %2200 = vmatprep.subr.bf16.mxu1 %v2405_v0 }
 0x1ea   :  { %2202 = vmatpush3.bf16.msra.mxu1 %v2201_v58 }
 0x1eb   :  { %2203 = vmatprep.subr.bf16.mxu1 %v2405_v0 }
 0x1ed   :  { %1869 = vmatmul.mubr.f32.vlgmr.msra.gmra.mrb[0].mxu1 %v2838_v38 }
 0x1ee   :  { %2205 = vmatpush3.bf16.msra.mxu1 %v2204_v55  ;;  %1903 = vmatprep.mubr.msk.f32.mxu1 %vm2406_vm0, %v2407_v1 }
 0x1ef   :  { %2206 = vmatprep.subr.bf16.mxu1 %v2405_v0 }
 0x1f2   :  { %2208 = vmatpush3.bf16.msra.mxu1 %v2207_v59 }
 0x1f3   :  { %2209 = vmatprep.subr.bf16.mxu1 %v2405_v0 }
 0x1f6   :  { %2211 = vmatpush3.bf16.msra.mxu1 %v2210_v28 }
 0x1f7   :  { %2212 = vmatprep.subr.bf16.mxu1 %v2405_v0 }
 0x1fa   :  { %2214 = vmatpush3.bf16.msra.mxu1 %v2213_v37 }
 0x1fb   :  { %2215 = vmatprep.subr.bf16.mxu1 %v2405_v0 }
 0x1fe   :  { %2217 = vmatpush3.bf16.msra.mxu1 %v2216_v39 }
 0x1ff   :  { %2218 = vmatprep.subr.bf16.mxu1 %v2405_v0 }
 0x202   :  { %2220 = vmatpush3.bf16.msra.mxu1 %v2219_v9 }
 0x203   :  { %2221 = vmatprep.subr.bf16.mxu1 %v2405_v0 }
 0x206   :  { %2223 = vmatpush3.bf16.msra.mxu1 %v2222_v15 }
 0x207   :  { %2224 = vmatprep.subr.bf16.mxu1 %v2405_v0 }
 0x20a   :  { %2226 = vmatpush3.bf16.msra.mxu1 %v2225_v41 }
 0x20b   :  { %2227 = vmatprep.subr.bf16.mxu1 %v2405_v0 }
 0x20d   :  { %1904 = vmatmul.mubr.f32.vlgmr.msra.gmra.mrb[0].mxu1 %v810_v6 }
 0x20e   :  { %2229 = vmatpush3.bf16.msra.mxu1 %v2606_v47  ;;  %1938 = vmatprep.mubr.msk.f32.mxu1 %vm2406_vm0, %v2407_v1 }
 0x20f   :  { %2230 = vmatprep.subr.bf16.mxu1 %v2405_v0 }
 0x212   :  { %2232 = vmatpush3.bf16.msra.mxu1 %v2616_v53 }
 0x213   :  { %2233 = vmatprep.subr.bf16.mxu1 %v2405_v0 }
 0x216   :  { %2235 = vmatpush3.bf16.msra.mxu1 %v2638_v5 }
 0x217   :  { %2236 = vmatprep.subr.bf16.mxu1 %v2405_v0 }
 0x21a   :  { %2238 = vmatpush3.bf16.msra.mxu1 %v2645_v8 }
 0x21b   :  { %2239 = vmatprep.subr.bf16.mxu1 %v2405_v0 }
 0x21e   :  { %2241 = vmatpush3.bf16.msra.mxu1 %v2652_v51 }
 0x21f   :  { %2242 = vmatprep.subr.bf16.mxu1 %v2405_v0 }
 0x222   :  { %2244 = vmatpush3.bf16.msra.mxu1 %v2723_v45 }
 0x223   :  { %2245 = vmatprep.subr.bf16.mxu1 %v2405_v0 }
 0x226   :  { %2247 = vmatpush3.bf16.msra.mxu1 %v2727_v60 }
 0x227   :  { %2248 = vmatprep.subr.bf16.mxu1 %v2405_v0 }
 0x22a   :  { %2250 = vmatpush3.bf16.msra.mxu1 %v2741_v34 }
 0x22b   :  { %2251 = vmatprep.subr.bf16.mxu1 %v2405_v0 }
 0x22d   :  { %1939 = vmatmul.mubr.f32.vlgmr.msra.gmra.mrb[0].mxu1 %v811_v57 }
 0x22e   :  { %2253 = vmatpush3.bf16.msra.mxu1 %v2252_v40  ;;  %1973 = vmatprep.mubr.msk.f32.mxu1 %vm2406_vm0, %v2407_v1 }
 0x22f   :  { %2254 = vmatprep.subr.bf16.mxu1 %v2405_v0 }
 0x232   :  { %2256 = vmatpush3.bf16.msra.mxu1 %v2255_v17 }
 0x233   :  { %2257 = vmatprep.subr.bf16.mxu1 %v2405_v0 }
 0x236   :  { %2259 = vmatpush3.bf16.msra.mxu1 %v2258_v33 }
 0x237   :  { %2260 = vmatprep.subr.bf16.mxu1 %v2405_v0 }
 0x23a   :  { %2262 = vmatpush3.bf16.msra.mxu1 %v2261_v42 }
 0x23b   :  { %2263 = vmatprep.subr.bf16.mxu1 %v2405_v0 }
 0x23e   :  { %2265 = vmatpush3.bf16.msra.mxu1 %v2264_v48 }
 0x23f   :  { %2266 = vmatprep.subr.bf16.mxu1 %v2405_v0 }
 0x242   :  { %2268 = vmatpush3.bf16.msra.mxu1 %v2267_v56 }
 0x243   :  { %2269 = vmatprep.subr.bf16.mxu1 %v2405_v0 }
 0x246   :  { %2271 = vmatpush3.bf16.msra.mxu1 %v2270_v43 }
 0x247   :  { %2272 = vmatprep.subr.bf16.mxu1 %v2405_v0 }
 0x24a   :  { %2274 = vmatpush3.bf16.msra.mxu1 %v2273_v23 }
 0x24b   :  { %2275 = vmatprep.subr.bf16.mxu1 %v2405_v0 }
 0x24d   :  { %1974 = vmatmul.mubr.f32.vlgmr.msra.gmra.mrb[0].mxu1 %v2838_v38 }
 0x24e   :  { %2277 = vmatpush3.bf16.msra.mxu1 %v2606_v47  ;;  %2008 = vmatprep.mubr.msk.f32.mxu1 %vm2406_vm0, %v2407_v1  ;;  %v158_v1 = vadd.f32 nan, %v2832_v49 }
 0x24f   :  { %2278 = vmatprep.subr.bf16.mxu1 %v2405_v0 }
 0x250   :  { %v309_v47 = vadd.f32 nan, %v158_v1 }
 0x252   :  { %2280 = vmatpush3.bf16.msra.mxu1 %v2616_v53  ;;  %v413_v53 = vadd.f32 nan, %v309_v47 }
 0x253   :  { %2281 = vmatprep.subr.bf16.mxu1 %v2405_v0 }
 0x256   :  { %2283 = vmatpush3.bf16.msra.mxu1 %v2638_v5  ;;  %v502_v5 = vadd.f32 nan, %v413_v53 }
 0x257   :  { %2284 = vmatprep.subr.bf16.mxu1 %v2405_v0 }
 0x25a   :  { %2286 = vmatpush3.bf16.msra.mxu1 %v2645_v8  ;;  %v621_v8 = vadd.f32 nan, %v502_v5 }
 0x25b   :  { %2287 = vmatprep.subr.bf16.mxu1 %v2405_v0 }
 0x25e   :  { %2289 = vmatpush3.bf16.msra.mxu1 %v2652_v51  ;;  %v708_v51 = vadd.f32 %v2834_v21, %v621_v8 }
 0x25f   :  { %2290 = vmatprep.subr.bf16.mxu1 %v2405_v0 }
 0x262   :  { %2292 = vmatpush3.bf16.msra.mxu1 %v2723_v45 }
 0x263   :  { %2293 = vmatprep.subr.bf16.mxu1 %v2405_v0 }
 0x266   :  { %2295 = vmatpush3.bf16.msra.mxu1 %v2727_v60 }
 0x267   :  { %2296 = vmatprep.subr.bf16.mxu1 %v2405_v0 }
 0x26a   :  { %2298 = vmatpush3.bf16.msra.mxu1 %v2741_v34 }
 0x26d   :  { %2009 = vmatmul.mubr.f32.vlgmr.msra.gmra.mrb[0].mxu1 %v2838_v38 }
 0x340   :  { %v1365_v45 = vpop.f32.mrb[0].mxu1 }
 0x341   :  { %v2300_v63 = vadd.f32 %v1365_v45, %v708_v51  ;;  %v2010_v31 = vpop.f32.mrb[1].mxu1 }
 0x343   :  { %1369 = vst [vmem:[#allocation7] sm:$0xff] %v2300_v63 }
 0x344   :  { %2384 = shalt.err (!%p2381_p6)
}
 0x345   :  { %s2385_s20 = scalar_lea.hbm %s2960_s4, 128 }
 0x346   :  { %p2386_p7 = scmp.ne.s32.totalorder %s2960_s4, %s2385_s20  ;;  %p2389_p8 = scmp.lt.u32.totalorder %s2385_s20, %s2960_s4 }
 0x348   :  { %p2391_p9 = pnand %p2389_p8, %p2386_p7 }
 0x34a   :  { %2394 = shalt.err (!%p2391_p9)
}
 0x34b   :  { %1379 = dma.vmem_to_hbm [thread:$0]  %s1377_s16, 128, %s2960_s4, [#allocation4]  }
 0x34c   :  { %2399 = dma.done.wait [#allocation4], 128  }
 0x34d   :  { %2400 = vsyncadd [#allocation4], 4294967168 }
 0x34e   :  { %1383 = vsyncpa [#allocation3], 1 }
 0x34f   :  { %1384 = vsyncpa [#allocation6], 1 }
 0x350   :  { %1385 = vsyncpa [#allocation4], 1 }

</bundles_post_ra>
